<compile_context>
chip_gen: v7x
topology: tpu7x:2x2x1
jax: 0.10.0
libtpu: 0.0.40
codegen_flags: <defaults>
</compile_context>

<pallas_src>
import jax
import jax.numpy as jnp
from jax.experimental import pallas as pl
from jax.experimental.pallas import tpu as pltpu

HIDDEN = 256
NUM_CLASSES = 26
OUT_PAD = 128          # lane-dense padded output width (>= NUM_CLASSES)
BN_EPS = 1e-5

_VMEM_TILE_BUDGET = 20 * 1024 * 1024   # per-step working-set target (bytes)


def _round_up(x, m):
    return ((x + m - 1) // m) * m


# ---------------------------------------------------------------------------
# Kernel
# ---------------------------------------------------------------------------
def fusion_kernel(
    xc_ref, xb_ref, xf_ref, xt_ref,          # (TILE_B, fan_in_i) tiles (bf16 preferred)
    wc_ref, wb_ref, wf_ref, wt_ref,          # folded (fan_in_i, 256) bf16 weights
    b1_ref,                                  # folded (1, 256) f32 bias (fc1 bias + BN)
    w2_ref, b2_ref,                          # (256, 128) bf16 / (1, 128) f32, zero-padded
    out_ref,                                 # (TILE_B, 128) bf16
):
    cdt = wc_ref.dtype  # bf16 compute dtype for MXU; accumulation stays f32
    # astype is a no-op when the inputs already arrive in bf16 (preferred path).
    h = jnp.dot(xc_ref[...].astype(cdt), wc_ref[...], preferred_element_type=jnp.float32)
    h = h + jnp.dot(xb_ref[...].astype(cdt), wb_ref[...], preferred_element_type=jnp.float32)
    h = h + jnp.dot(xf_ref[...].astype(cdt), wf_ref[...], preferred_element_type=jnp.float32)
    h = h + jnp.dot(xt_ref[...].astype(cdt), wt_ref[...], preferred_element_type=jnp.float32)

    # fc1 bias + eval-mode BN are already folded into b1_ref / the weights.
    h = jnp.maximum(h + b1_ref[...], 0.0)            # ReLU; Dropout = identity (eval)

    # fc2 (output padded to 128 lanes -> unmasked lane-dense stores).
    out = jnp.dot(h.astype(w2_ref.dtype), w2_ref[...],
                  preferred_element_type=jnp.float32) + b2_ref[...]
    out_ref[...] = out.astype(out_ref.dtype)


# ---------------------------------------------------------------------------
# Tile selection
# ---------------------------------------------------------------------------
def _choose_tile_b(B, total_fan_in, in_itemsize, out_itemsize, requested=None):
    """Pick the largest batch tile that keeps the per-step VMEM footprint under
    budget, never exceeds the (sublane-rounded) batch, and keeps >=2 grid steps
    on large batches so both v7x TensorCores get work."""

    def vmem_est(t):
        x_bytes = 2 * t * total_fan_in * in_itemsize                 # double-buffered x tiles
        cast_bytes = t * total_fan_in * 2 if in_itemsize > 2 else 0  # bf16 copies if x is f32
        hid_bytes = t * HIDDEN * (4 + 2)                             # f32 hidden + bf16 cast
        out_bytes = 2 * t * OUT_PAD * out_itemsize                   # double-buffered out
        return x_bytes + cast_bytes + hid_bytes + out_bytes

    tile = 4096 if requested is None else max(8, _round_up(requested, 8))
    while tile > 256 and vmem_est(tile) > _VMEM_TILE_BUDGET:
        tile //= 2
    tile = min(tile, _round_up(B, 8))            # never bigger than the batch
    tile = max(8, _round_up(tile, 8))            # sublane multiple
    # v7x megacore: avoid grid=(1,) when there is enough work to split.
    if B > 1024 and pl.cdiv(B, tile) == 1:
        tile = max(8, _round_up(pl.cdiv(B, 2), 8))
    return tile


# ---------------------------------------------------------------------------
# Wrapper
# ---------------------------------------------------------------------------
def fusion_concat_forward(x_context, x_body, x_face, x_text, fp, *,
                          tile_b=None, out_dtype=jnp.bfloat16):
    """Fused eval-mode forward.

    fp: folded params from fold_params().
    Returns the lane-padded (B, OUT_PAD) output in `out_dtype`; the real logits
    are out[:, :NUM_CLASSES]. The slice is deliberately left to the consumer
    (or fused into the next op) to avoid an extra HBM pass after a
    bandwidth-bound kernel.
    """
    B = x_context.shape[0]
    fans = (x_context.shape[1], x_body.shape[1], x_face.shape[1], x_text.shape[1])
    total_fan = sum(fans)
    in_itemsize = max(a.dtype.itemsize for a in (x_context, x_body, x_face, x_text))
    out_itemsize = jnp.dtype(out_dtype).itemsize

    tile_b = _choose_tile_b(B, total_fan, in_itemsize, out_itemsize, tile_b)
    grid = (pl.cdiv(B, tile_b),)    # ragged last block handled by Pallas masking

    def x_spec(d):
        return pl.BlockSpec((tile_b, d), lambda i: (i, 0))

    def const_spec(arr):
        # Full-array block, constant index -> stays resident in VMEM across tiles.
        return pl.BlockSpec(arr.shape, lambda i: (0, 0))

    flops = 2 * B * total_fan * HIDDEN + 2 * B * HIDDEN * OUT_PAD
    bytes_accessed = (
        sum(int(a.size) * a.dtype.itemsize for a in (x_context, x_body, x_face, x_text))
        + sum(int(v.size) * v.dtype.itemsize for v in fp.values())
        + B * OUT_PAD * out_itemsize
    )

    return pl.pallas_call(
        fusion_kernel,
        out_shape=jax.ShapeDtypeStruct((B, OUT_PAD), out_dtype),
        grid_spec=pltpu.PrefetchScalarGridSpec(
            num_scalar_prefetch=0,
            grid=grid,
            in_specs=[
                x_spec(fans[0]), x_spec(fans[1]), x_spec(fans[2]), x_spec(fans[3]),
                const_spec(fp["wc"]), const_spec(fp["wb"]),
                const_spec(fp["wf"]), const_spec(fp["wt"]),
                const_spec(fp["b1"]),
                const_spec(fp["w2"]), const_spec(fp["b2"]),
            ],
            out_specs=pl.BlockSpec((tile_b, OUT_PAD), lambda i: (i, 0)),
        ),
        compiler_params=pltpu.CompilerParams(
            dimension_semantics=("parallel",),
            vmem_limit_bytes=32 * 1024 * 1024,
        ),
        cost_estimate=pl.CostEstimate(
            flops=flops, transcendentals=0, bytes_accessed=bytes_accessed
        ),
    )(x_context, x_body, x_face, x_text,
      fp["wc"], fp["wb"], fp["wf"], fp["wt"], fp["b1"], fp["w2"], fp["b2"])


# ---------------------------------------------------------------------------
# Parameter construction + one-time constant folding
# ---------------------------------------------------------------------------
def make_params(key, n_ctx, n_body, n_face, n_text):
    """Deterministic synthetic parameters (shapes mirror the nn.Module __init__);
    linear weights stored pre-transposed as (in_features, out_features)."""
    ks = jax.random.split(key, 16)

    def lin(kw, kb, fan_in, fan_out):
        w = jax.random.normal(kw, (fan_in, fan_out), jnp.float32) * (1.0 / jnp.sqrt(fan_in))
        b = jax.random.normal(kb, (1, fan_out), jnp.float32) * 0.01
        return w, b

    wc, bc = lin(ks[0], ks[1], n_ctx, HIDDEN)
    wb, bb = lin(ks[2], ks[3], n_body, HIDDEN)
    wf, bf = lin(ks[4], ks[5], n_face, HIDDEN)
    wt, bt = lin(ks[6], ks[7], n_text, HIDDEN)
    w1, b1 = lin(ks[8], ks[9], 4 * HIDDEN, HIDDEN)
    w2, b2 = lin(ks[10], ks[11], HIDDEN, NUM_CLASSES)

    gamma = 1.0 + 0.05 * jax.random.normal(ks[12], (1, HIDDEN), jnp.float32)
    beta = 0.05 * jax.random.normal(ks[13], (1, HIDDEN), jnp.float32)
    rmean = 0.05 * jax.random.normal(ks[14], (1, HIDDEN), jnp.float32)
    rvar = 1.0 + 0.1 * jax.random.uniform(ks[15], (1, HIDDEN), jnp.float32)

    return dict(wc=wc, bc=bc, wb=wb, bb=bb, wf=wf, bf=bf, wt=wt, bt=bt,
                w1=w1, b1=b1, w2=w2, b2=b2,
                gamma=gamma, beta=beta, rmean=rmean, rvar=rvar)


def fold_params(p, compute_dtype=jnp.bfloat16):
    """One-time (load/export-time) constant fold of concat+fc1 and eval-mode BN
    into the per-modality projection weights. Must be re-run if BN running
    stats or any weights change (i.e. do NOT use while training).

    Note: if the producer can hand over a single pre-concatenated (B, sum_fan)
    feature tensor, the four folded weights below can likewise be concatenated
    offline into one (sum_fan, 256) matrix for a single K=sum_fan matmul."""
    scale = p["gamma"] * jax.lax.rsqrt(p["rvar"] + BN_EPS)        # (1, 256)
    w1 = p["w1"]                                                   # (1024, 256)

    mods = [("wc", "bc"), ("wb", "bb"), ("wf", "bf"), ("wt", "bt")]
    w_eff = {}
    b_eff = p["b1"]
    for idx, (wk, bk) in enumerate(mods):
        w1_i = w1[idx * HIDDEN:(idx + 1) * HIDDEN, :]              # (256, 256)
        w_eff[wk] = ((p[wk] @ w1_i) * scale).astype(compute_dtype)  # (fan_in_i, 256)
        b_eff = b_eff + p[bk] @ w1_i
    b_eff = (b_eff - p["rmean"]) * scale + p["beta"]               # BN fold, f32

    w2_pad = jnp.zeros((HIDDEN, OUT_PAD), jnp.float32)
    w2_pad = w2_pad.at[:, :NUM_CLASSES].set(p["w2"]).astype(compute_dtype)
    b2_pad = jnp.zeros((1, OUT_PAD), jnp.float32)
    b2_pad = b2_pad.at[:, :NUM_CLASSES].set(p["b2"])

    return dict(wc=w_eff["wc"], wb=w_eff["wb"], wf=w_eff["wf"], wt=w_eff["wt"],
                b1=b_eff.astype(jnp.float32), w2=w2_pad, b2=b2_pad)


# ---------------------------------------------------------------------------
# References
# ---------------------------------------------------------------------------
def reference_forward(xc, xb, xf, xt, p):
    """Original (unfolded) f32 eval-mode forward, mirrors the PyTorch module."""
    xc, xb, xf, xt = (a.astype(jnp.float32) for a in (xc, xb, xf, xt))
    hc = xc @ p["wc"] + p["bc"]
    hb = xb @ p["wb"] + p["bb"]
    hf = xf @ p["wf"] + p["bf"]
    ht = xt @ p["wt"] + p["bt"]
    fuse = jnp.concatenate([hc, hb, hf, ht], axis=1)
    h1 = fuse @ p["w1"] + p["b1"]
    h1 = (h1 - p["rmean"]) * jax.lax.rsqrt(p["rvar"] + BN_EPS) * p["gamma"] + p["beta"]
    h1 = jnp.maximum(h1, 0.0)
    return h1 @ p["w2"] + p["b2"]


def reference_forward_folded(xc, xb, xf, xt, fp):
    """Same math as the kernel (bf16 operands, f32 accumulation), in plain jnp."""
    cdt = fp["wc"].dtype
    h = jnp.dot(xc.astype(cdt), fp["wc"], preferred_element_type=jnp.float32)
    h = h + jnp.dot(xb.astype(cdt), fp["wb"], preferred_element_type=jnp.float32)
    h = h + jnp.dot(xf.astype(cdt), fp["wf"], preferred_element_type=jnp.float32)
    h = h + jnp.dot(xt.astype(cdt), fp["wt"], preferred_element_type=jnp.float32)
    h = jnp.maximum(h + fp["b1"], 0.0)
    out = jnp.dot(h.astype(fp["w2"].dtype), fp["w2"],
                  preferred_element_type=jnp.float32) + fp["b2"]
    return out[:, :NUM_CLASSES]


# ---------------------------------------------------------------------------
if __name__ == "__main__":
    n_ctx, n_body, n_face, n_text = 128, 96, 64, 32

    key = jax.random.PRNGKey(0)
    k_in, k_par = jax.random.split(key)
    params = make_params(k_par, n_ctx, n_body, n_face, n_text)
    folded = fold_params(params)            # one-time fold at "load" time

    def make_inputs(k, B):
        ki = jax.random.split(k, 4)
        # Upstream layer hands over bf16 features (no wrapper-side astype pass).
        mk = lambda kk, d: jax.random.normal(kk, (B, d), jnp.float32).astype(jnp.bfloat16)
        return (mk(ki[0], n_ctx), mk(ki[1], n_body), mk(ki[2], n_face), mk(ki[3], n_text))

    # --- small batch (B=4, single ragged block) -----------------------------
    B = 4
    xc, xb, xf, xt = make_inputs(k_in, B)
    out_pad = fusion_concat_forward(xc, xb, xf, xt, folded)
    out_pad = jax.block_until_ready(out_pad)
    assert out_pad.shape == (B, OUT_PAD)
    logits = out_pad[:, :NUM_CLASSES].astype(jnp.float32)   # consumer-side lazy slice

    ref_same = reference_forward_folded(xc, xb, xf, xt, folded)
    assert jnp.allclose(logits, ref_same, atol=1e-2, rtol=1e-2)
    ref_full = reference_forward(xc, xb, xf, xt, params)
    assert jnp.allclose(logits, ref_full, atol=4e-2, rtol=4e-2)

    # --- multi-step grid with a ragged last block (no padding pass) ---------
    B2 = 300
    xc2, xb2, xf2, xt2 = make_inputs(jax.random.PRNGKey(1), B2)
    out2 = fusion_concat_forward(xc2, xb2, xf2, xt2, folded, tile_b=128)
    out2 = jax.block_until_ready(out2)
    logits2 = out2[:, :NUM_CLASSES].astype(jnp.float32)
    ref2 = reference_forward_folded(xc2, xb2, xf2, xt2, folded)
    assert jnp.allclose(logits2, ref2, atol=1e-2, rtol=1e-2)

    print("KERNEL_OK")
</pallas_src>

<mosaic_0001>
module attributes {stable_mosaic.version = 11 : i64} {
  func.func @fusion_kernel(%arg0: i32, %arg1: memref<8x128xbf16, #tpu.memory_space<vmem>>, %arg2: memref<8x96xbf16, #tpu.memory_space<vmem>>, %arg3: memref<8x64xbf16, #tpu.memory_space<vmem>>, %arg4: memref<8x32xbf16, #tpu.memory_space<vmem>>, %arg5: memref<128x256xbf16, #tpu.memory_space<vmem>>, %arg6: memref<96x256xbf16, #tpu.memory_space<vmem>>, %arg7: memref<64x256xbf16, #tpu.memory_space<vmem>>, %arg8: memref<32x256xbf16, #tpu.memory_space<vmem>>, %arg9: memref<1x256xf32, #tpu.memory_space<vmem>>, %arg10: memref<256x128xbf16, #tpu.memory_space<vmem>>, %arg11: memref<1x128xf32, #tpu.memory_space<vmem>>, %arg12: memref<8x128xbf16, #tpu.memory_space<vmem>>) attributes {dimension_semantics = [#tpu.dimension_semantics<parallel>], iteration_bounds = array<i64: 1>, scalar_prefetch = 0 : i64, scratch_operands = 0 : i64, tpu.core_type = #tpu.core_type<tc>, window_params = [{transform_indices = @transform_0, window_bounds = array<i64: 8, 128>}, {transform_indices = @transform_1, window_bounds = array<i64: 8, 96>}, {transform_indices = @transform_2, window_bounds = array<i64: 8, 64>}, {transform_indices = @transform_3, window_bounds = array<i64: 8, 32>}, {pipeline_mode = #tpu.pipeline_mode<synchronous>, transform_indices = @transform_4, window_bounds = array<i64: 128, 256>}, {pipeline_mode = #tpu.pipeline_mode<synchronous>, transform_indices = @transform_5, window_bounds = array<i64: 96, 256>}, {pipeline_mode = #tpu.pipeline_mode<synchronous>, transform_indices = @transform_6, window_bounds = array<i64: 64, 256>}, {pipeline_mode = #tpu.pipeline_mode<synchronous>, transform_indices = @transform_7, window_bounds = array<i64: 32, 256>}, {pipeline_mode = #tpu.pipeline_mode<synchronous>, transform_indices = @transform_8, window_bounds = array<i64: 1, 256>}, {pipeline_mode = #tpu.pipeline_mode<synchronous>, transform_indices = @transform_9, window_bounds = array<i64: 256, 128>}, {pipeline_mode = #tpu.pipeline_mode<synchronous>, transform_indices = @transform_10, window_bounds = array<i64: 1, 128>}, {transform_indices = @transform_11, window_bounds = array<i64: 8, 128>}]} {
    %c0 = arith.constant 0 : index
    %c0_0 = arith.constant 0 : index
    %0 = vector.load %arg1[%c0, %c0_0] : memref<8x128xbf16, #tpu.memory_space<vmem>>, vector<8x128xbf16>
    %c0_1 = arith.constant 0 : index
    %c0_2 = arith.constant 0 : index
    %1 = vector.load %arg5[%c0_1, %c0_2] : memref<128x256xbf16, #tpu.memory_space<vmem>>, vector<128x256xbf16>
    %cst = arith.constant dense<0.000000e+00> : vector<8x256xf32>
    %2 = tpu.matmul %0, %1, %cst {dimension_numbers = #tpu.dot_dimension_numbers<[1], [0], [0], [1], [0, 0, 1, 1], [], []>} : vector<8x128xbf16>, vector<128x256xbf16>, vector<8x256xf32> -> vector<8x256xf32>
    %c0_3 = arith.constant 0 : index
    %c0_4 = arith.constant 0 : index
    %3 = vector.load %arg2[%c0_3, %c0_4] : memref<8x96xbf16, #tpu.memory_space<vmem>>, vector<8x96xbf16>
    %c0_5 = arith.constant 0 : index
    %c0_6 = arith.constant 0 : index
    %4 = vector.load %arg6[%c0_5, %c0_6] : memref<96x256xbf16, #tpu.memory_space<vmem>>, vector<96x256xbf16>
    %cst_7 = arith.constant dense<0.000000e+00> : vector<8x256xf32>
    %5 = tpu.matmul %3, %4, %cst_7 {dimension_numbers = #tpu.dot_dimension_numbers<[1], [0], [0], [1], [0, 0, 1, 1], [], []>} : vector<8x96xbf16>, vector<96x256xbf16>, vector<8x256xf32> -> vector<8x256xf32>
    %6 = arith.addf %2, %5 : vector<8x256xf32>
    %c0_8 = arith.constant 0 : index
    %c0_9 = arith.constant 0 : index
    %7 = vector.load %arg3[%c0_8, %c0_9] : memref<8x64xbf16, #tpu.memory_space<vmem>>, vector<8x64xbf16>
    %c0_10 = arith.constant 0 : index
    %c0_11 = arith.constant 0 : index
    %8 = vector.load %arg7[%c0_10, %c0_11] : memref<64x256xbf16, #tpu.memory_space<vmem>>, vector<64x256xbf16>
    %cst_12 = arith.constant dense<0.000000e+00> : vector<8x256xf32>
    %9 = tpu.matmul %7, %8, %cst_12 {dimension_numbers = #tpu.dot_dimension_numbers<[1], [0], [0], [1], [0, 0, 1, 1], [], []>} : vector<8x64xbf16>, vector<64x256xbf16>, vector<8x256xf32> -> vector<8x256xf32>
    %10 = arith.addf %6, %9 : vector<8x256xf32>
    %c0_13 = arith.constant 0 : index
    %c0_14 = arith.constant 0 : index
    %11 = vector.load %arg4[%c0_13, %c0_14] : memref<8x32xbf16, #tpu.memory_space<vmem>>, vector<8x32xbf16>
    %c0_15 = arith.constant 0 : index
    %c0_16 = arith.constant 0 : index
    %12 = vector.load %arg8[%c0_15, %c0_16] : memref<32x256xbf16, #tpu.memory_space<vmem>>, vector<32x256xbf16>
    %cst_17 = arith.constant dense<0.000000e+00> : vector<8x256xf32>
    %13 = tpu.matmul %11, %12, %cst_17 {dimension_numbers = #tpu.dot_dimension_numbers<[1], [0], [0], [1], [0, 0, 1, 1], [], []>} : vector<8x32xbf16>, vector<32x256xbf16>, vector<8x256xf32> -> vector<8x256xf32>
    %14 = arith.addf %10, %13 : vector<8x256xf32>
    %c0_18 = arith.constant 0 : index
    %c0_19 = arith.constant 0 : index
    %15 = vector.load %arg9[%c0_18, %c0_19] : memref<1x256xf32, #tpu.memory_space<vmem>>, vector<1x256xf32>
    %16 = vector.broadcast %15 : vector<1x256xf32> to vector<8x256xf32>
    %17 = arith.addf %14, %16 : vector<8x256xf32>
    %cst_20 = arith.constant 0.000000e+00 : f32
    %18 = vector.broadcast %cst_20 : f32 to vector<8x256xf32>
    %19 = arith.maximumf %17, %18 : vector<8x256xf32>
    %20 = arith.truncf %19 : vector<8x256xf32> to vector<8x256xbf16>
    %c0_21 = arith.constant 0 : index
    %c0_22 = arith.constant 0 : index
    %21 = vector.load %arg10[%c0_21, %c0_22] : memref<256x128xbf16, #tpu.memory_space<vmem>>, vector<256x128xbf16>
    %cst_23 = arith.constant dense<0.000000e+00> : vector<8x128xf32>
    %22 = tpu.matmul %20, %21, %cst_23 {dimension_numbers = #tpu.dot_dimension_numbers<[1], [0], [0], [1], [0, 0, 1, 1], [], []>} : vector<8x256xbf16>, vector<256x128xbf16>, vector<8x128xf32> -> vector<8x128xf32>
    %c0_24 = arith.constant 0 : index
    %c0_25 = arith.constant 0 : index
    %23 = vector.load %arg11[%c0_24, %c0_25] : memref<1x128xf32, #tpu.memory_space<vmem>>, vector<1x128xf32>
    %24 = vector.broadcast %23 : vector<1x128xf32> to vector<8x128xf32>
    %25 = arith.addf %22, %24 : vector<8x128xf32>
    %26 = arith.truncf %25 : vector<8x128xf32> to vector<8x128xbf16>
    %c0_26 = arith.constant 0 : index
    %c0_27 = arith.constant 0 : index
    %27 = vector.load %arg12[%c0_26, %c0_27] : memref<8x128xbf16, #tpu.memory_space<vmem>>, vector<8x128xbf16>
    tpu.vector_store %arg12[%c0_26, %c0_27], %26 {strides = array<i32>} : memref<8x128xbf16, #tpu.memory_space<vmem>>, vector<8x128xbf16>,
    return
  }
  func.func @transform_0(%arg0: i32) -> (i32, i32) {
    %c0_i32 = arith.constant 0 : i32
    %c0_i32_0 = arith.constant 0 : i32
    return %arg0, %c0_i32 : i32, i32
  }
  func.func @transform_1(%arg0: i32) -> (i32, i32) {
    %c0_i32 = arith.constant 0 : i32
    %c0_i32_0 = arith.constant 0 : i32
    return %arg0, %c0_i32 : i32, i32
  }
  func.func @transform_2(%arg0: i32) -> (i32, i32) {
    %c0_i32 = arith.constant 0 : i32
    %c0_i32_0 = arith.constant 0 : i32
    return %arg0, %c0_i32 : i32, i32
  }
  func.func @transform_3(%arg0: i32) -> (i32, i32) {
    %c0_i32 = arith.constant 0 : i32
    %c0_i32_0 = arith.constant 0 : i32
    return %arg0, %c0_i32 : i32, i32
  }
  func.func @transform_4(%arg0: i32) -> (i32, i32) {
    %c0_i32 = arith.constant 0 : i32
    %c0_i32_0 = arith.constant 0 : i32
    %c0_i32_1 = arith.constant 0 : i32
    return %c0_i32, %c0_i32_0 : i32, i32
  }
  func.func @transform_5(%arg0: i32) -> (i32, i32) {
    %c0_i32 = arith.constant 0 : i32
    %c0_i32_0 = arith.constant 0 : i32
    %c0_i32_1 = arith.constant 0 : i32
    return %c0_i32, %c0_i32_0 : i32, i32
  }
  func.func @transform_6(%arg0: i32) -> (i32, i32) {
    %c0_i32 = arith.constant 0 : i32
    %c0_i32_0 = arith.constant 0 : i32
    %c0_i32_1 = arith.constant 0 : i32
    return %c0_i32, %c0_i32_0 : i32, i32
  }
  func.func @transform_7(%arg0: i32) -> (i32, i32) {
    %c0_i32 = arith.constant 0 : i32
    %c0_i32_0 = arith.constant 0 : i32
    %c0_i32_1 = arith.constant 0 : i32
    return %c0_i32, %c0_i32_0 : i32, i32
  }
  func.func @transform_8(%arg0: i32) -> (i32, i32) {
    %c0_i32 = arith.constant 0 : i32
    %c0_i32_0 = arith.constant 0 : i32
    %c0_i32_1 = arith.constant 0 : i32
    return %c0_i32, %c0_i32_0 : i32, i32
  }
  func.func @transform_9(%arg0: i32) -> (i32, i32) {
    %c0_i32 = arith.constant 0 : i32
    %c0_i32_0 = arith.constant 0 : i32
    %c0_i32_1 = arith.constant 0 : i32
    return %c0_i32, %c0_i32_0 : i32, i32
  }
  func.func @transform_10(%arg0: i32) -> (i32, i32) {
    %c0_i32 = arith.constant 0 : i32
    %c0_i32_0 = arith.constant 0 : i32
    %c0_i32_1 = arith.constant 0 : i32
    return %c0_i32, %c0_i32_0 : i32, i32
  }
  func.func @transform_11(%arg0: i32) -> (i32, i32) {
    %c0_i32 = arith.constant 0 : i32
    %c0_i32_0 = arith.constant 0 : i32
    return %arg0, %c0_i32 : i32, i32
  }
}

</mosaic_0001>

<bundles_post_ra>
// kernel: tpu_custom_call.1
= control target key start
LH: loop header
LB: loop body
LE: loop exit
PB: predicated region body
PF: predicated region fallthrough
CT: control target
= control target key end

     0   :  { %16 = vsyncpa [#allocation3], 0  ;;  %s1373_s0 = inlined_call_operand.hbm [shape: bf16[4,128], index: 0, kind: input, shape index: {}]   ;;  %s1374_s1 = inlined_call_operand.vmem [shape: bf16[4,96], index: 1, kind: input, shape index: {}]   ;;  %s1375_s2 = inlined_call_operand.vmem [shape: bf16[4,64], index: 2, kind: input, shape index: {}]   ;;  %s1376_s3 = inlined_call_operand.vmem [shape: bf16[4,32], index: 3, kind: input, shape index: {}]   ;;  %s1377_s4 = inlined_call_operand.hbm [shape: bf16[128,256], index: 4, kind: input, shape index: {}]   ;;  %s1378_s5 = inlined_call_operand.hbm [shape: bf16[96,256], index: 5, kind: input, shape index: {}]   ;;  %s1379_s6 = inlined_call_operand.hbm [shape: bf16[64,256], index: 6, kind: input, shape index: {}]   ;;  %s1380_s7 = inlined_call_operand.hbm [shape: bf16[32,256], index: 7, kind: input, shape index: {}]   ;;  %s1381_s8 = inlined_call_operand.vmem [shape: f32[1,256], index: 8, kind: input, shape index: {}]   ;;  %s1382_s9 = inlined_call_operand.hbm [shape: bf16[256,128], index: 9, kind: input, shape index: {}]   ;;  %s1383_s10 = inlined_call_operand.vmem [shape: f32[1,128], index: 10, kind: input, shape index: {}]   ;;  %s1384_s11 = inlined_call_operand.hbm [shape: bf16[4,128], index: 11, kind: output, shape index: {}]  }
   0x1   :  { %17 = vsyncpa [#allocation6], 0 }
   0x2   :  { %18 = vsyncpa [#allocation9], 0 }
   0x3   :  { %19 = vsyncpa [#allocation12], 0 }
   0x4   :  { %20 = vsyncpa [#allocation4], 0 }
   0x5   :  { %25 = vsyncadd [#allocation3], 32  ;;  %s1156_s17 = smov [#allocation5]   ;;  %s992_s21 = scalar_lea.hbm %s1377_s4, 2048 }
   0x6   :  { %s44_s18 = sshll.u32 %s1156_s17, 4  ;;  %p993_p0 = scmp.ne.s32.totalorder %s1377_s4, %s992_s21  ;;  %s45_s18 = int_to_ptr.vmem [resolvable:$true] %s44_s18 }
   0x7   :  { %p996_p1 = scmp.lt.u32.totalorder %s992_s21, %s1377_s4 }
   0x9   :  { %p998_p2 = pnand %p996_p1, %p993_p0 }
   0xb   :  { %1001 = shalt.err (!%p998_p2)
}
   0xc   :  { %s1002_s26 = scalar_lea.vmem %s45_s18, 2048  ;;  %p1007_p4 = scmp.lt.s32.totalorder %s45_s18, %s45_s18 }
   0xd   :  { %p1003_p3 = scmp.ne.s32.totalorder %s45_s18, %s1002_s26  ;;  %p1008_p5 = scmp.lt.s32.totalorder %s1002_s26, %s1002_s26 }
   0xf   :  { %p1009_p6 = por %p1008_p5, %p1007_p4 }
  0x11   :  { %p1010_p7 = pnand %p1009_p6, %p1003_p3 }
  0x13   :  { %1013 = shalt.err (!%p1010_p7)
}
  0x14   :  { %s1157_s27 = smov 128   ;;  %s1158_s28 = smov 8  }
  0x15   :  { %50 = dma.hbm_to_vmem [thread:$0]  %s1377_s4, 2048, %s45_s18, [#allocation6], %s1157_s27, %s1157_s27, %s1158_s28  }
  0x16   :  { %s1159_s12 = smov [#allocation8]   ;;  %s1160_s14 = smov [#allocation2]  }
  0x17   :  { %s68_s13 = sshll.u32 %s1159_s12, 4  ;;  %s26_s15 = sshll.u32 %s1160_s14, 4  ;;  %s69_s13 = int_to_ptr.vmem [resolvable:$true] %s68_s13  ;;  %s27_s15 = int_to_ptr.vmem [resolvable:$true] %s26_s15 }
  0x18   :  { %s1014_s19 = scalar_lea.hbm %s1379_s6, 1024 }
  0x19   :  { %p1015_p8 = scmp.ne.s32.totalorder %s1379_s6, %s1014_s19  ;;  %p1018_p9 = scmp.lt.u32.totalorder %s1014_s19, %s1379_s6 }
  0x1b   :  { %p1020_p10 = pnand %p1018_p9, %p1015_p8 }
  0x1d   :  { %1023 = shalt.err (!%p1020_p10)
}
  0x1e   :  { %s1024_s4 = scalar_lea.vmem %s69_s13, 1024  ;;  %p1029_p12 = scmp.lt.s32.totalorder %s69_s13, %s69_s13 }
  0x1f   :  { %p1025_p11 = scmp.ne.s32.totalorder %s69_s13, %s1024_s4  ;;  %p1030_p13 = scmp.lt.s32.totalorder %s1024_s4, %s1024_s4 }
  0x21   :  { %p1031_p0 = por %p1030_p13, %p1029_p12 }
  0x23   :  { %p1032_p1 = pnand %p1031_p0, %p1025_p11 }
  0x25   :  { %1035 = shalt.err (!%p1032_p1)
}
  0x26   :  { %74 = dma.hbm_to_vmem [thread:$0]  %s1379_s6, 1024, %s69_s13, [#allocation9], %s1157_s27, %s1157_s27, %s1158_s28  }
  0x27   :  { %s1036_s29 = scalar_lea.hbm %s1373_s0, 32 }
  0x28   :  { %p1037_p2 = scmp.ne.s32.totalorder %s1373_s0, %s1036_s29  ;;  %p1040_p3 = scmp.lt.u32.totalorder %s1036_s29, %s1373_s0 }
  0x2a   :  { %p1042_p4 = pnand %p1040_p3, %p1037_p2 }
  0x2c   :  { %1045 = shalt.err (!%p1042_p4)
}
  0x2d   :  { %s1046_s17 = scalar_lea.vmem %s27_s15, 32  ;;  %s1050_s19 = scalar_lea.vmem %s27_s15, 64 }
  0x2e   :  { %p1047_p5 = scmp.ne.s32.totalorder %s27_s15, %s1046_s17  ;;  %p1051_p6 = scmp.lt.s32.totalorder %s27_s15, %s27_s15 }
  0x2f   :  { %p1052_p7 = scmp.lt.s32.totalorder %s1050_s19, %s1046_s17 }
  0x31   :  { %p1053_p8 = por %p1052_p7, %p1051_p6 }
  0x33   :  { %p1054_p9 = pnand %p1053_p8, %p1047_p5 }
  0x35   :  { %1057 = shalt.err (!%p1054_p9)
}
  0x36   :  { %s1161_s6 = smov 32   ;;  %s1162_s13 = smov 2  }
  0x37   :  { %32 = dma.hbm_to_vmem [thread:$0]  %s1373_s0, 32, %s27_s15, [#allocation3], %s1161_s6, %s1161_s6, %s1162_s13  }
  0x38   :  { %s1163_s22 = smov [#allocation7]   ;;  %s1164_s4 = smov [#allocation10]  }
  0x39   :  { %s56_s23 = sshll.u32 %s1163_s22, 4  ;;  %s80_s18 = sshll.u32 %s1164_s4, 4  ;;  %s57_s23 = int_to_ptr.vmem [resolvable:$true] %s56_s23  ;;  %s81_s18 = int_to_ptr.vmem [resolvable:$true] %s80_s18 }
  0x3a   :  { %s1058_s26 = scalar_lea.hbm %s1378_s5, 1536 }
  0x3b   :  { %p1059_p10 = scmp.ne.s32.totalorder %s1378_s5, %s1058_s26  ;;  %p1062_p11 = scmp.lt.u32.totalorder %s1058_s26, %s1378_s5 }
  0x3d   :  { %p1064_p12 = pnand %p1062_p11, %p1059_p10 }
  0x3f   :  { %1067 = shalt.err (!%p1064_p12)
}
  0x40   :  { %s1068_s0 = scalar_lea.vmem %s57_s23, 1536  ;;  %p1073_p0 = scmp.lt.s32.totalorder %s57_s23, %s57_s23 }
  0x41   :  { %p1069_p13 = scmp.ne.s32.totalorder %s57_s23, %s1068_s0  ;;  %p1074_p1 = scmp.lt.s32.totalorder %s1068_s0, %s1068_s0 }
  0x43   :  { %p1075_p2 = por %p1074_p1, %p1073_p0 }
  0x45   :  { %p1076_p3 = pnand %p1075_p2, %p1069_p13 }
  0x47   :  { %1079 = shalt.err (!%p1076_p3)
}
  0x48   :  { %62 = dma.hbm_to_vmem [thread:$0]  %s1378_s5, 1536, %s57_s23, [#allocation6], %s1157_s27, %s1157_s27, %s1158_s28  }
  0x49   :  { %s1080_s20 = scalar_lea.hbm %s1380_s7, 512 }
  0x4a   :  { %p1081_p4 = scmp.ne.s32.totalorder %s1380_s7, %s1080_s20  ;;  %p1084_p5 = scmp.lt.u32.totalorder %s1080_s20, %s1380_s7 }
  0x4c   :  { %p1086_p6 = pnand %p1084_p5, %p1081_p4 }
  0x4e   :  { %1089 = shalt.err (!%p1086_p6)
}
  0x4f   :  { %s1090_s25 = scalar_lea.vmem %s81_s18, 512  ;;  %p1095_p8 = scmp.lt.s32.totalorder %s81_s18, %s81_s18 }
  0x50   :  { %p1091_p7 = scmp.ne.s32.totalorder %s81_s18, %s1090_s25  ;;  %p1096_p9 = scmp.lt.s32.totalorder %s1090_s25, %s1090_s25 }
  0x52   :  { %p1097_p10 = por %p1096_p9, %p1095_p8 }
  0x54   :  { %p1098_p11 = pnand %p1097_p10, %p1091_p7 }
  0x56   :  { %1101 = shalt.err (!%p1098_p11)
}
  0x57   :  { %86 = dma.hbm_to_vmem [thread:$0]  %s1380_s7, 512, %s81_s18, [#allocation9], %s1157_s27, %s1157_s27, %s1158_s28  }
  0x58   :  { %s1165_s26 = smov [#allocation11]   ;;  %s1102_s14 = scalar_lea.hbm %s1382_s9, 2048 }
  0x59   :  { %s94_s29 = sshll.u32 %s1165_s26, 4  ;;  %p1103_p12 = scmp.ne.s32.totalorder %s1382_s9, %s1102_s14  ;;  %s95_s29 = int_to_ptr.vmem [resolvable:$true] %s94_s29 }
  0x5a   :  { %p1106_p13 = scmp.lt.u32.totalorder %s1102_s14, %s1382_s9 }
  0x5c   :  { %p1108_p0 = pnand %p1106_p13, %p1103_p12 }
  0x5e   :  { %1111 = shalt.err (!%p1108_p0)
}
  0x5f   :  { %s1112_s19 = scalar_lea.vmem %s95_s29, 2048  ;;  %p1117_p2 = scmp.lt.s32.totalorder %s95_s29, %s95_s29 }
  0x60   :  { %p1113_p1 = scmp.ne.s32.totalorder %s95_s29, %s1112_s19  ;;  %p1118_p3 = scmp.lt.s32.totalorder %s1112_s19, %s1112_s19 }
  0x62   :  { %p1119_p4 = por %p1118_p3, %p1117_p2 }
  0x64   :  { %p1120_p5 = pnand %p1119_p4, %p1113_p1 }
  0x66   :  { %1123 = shalt.err (!%p1120_p5)
}
  0x67   :  { %s1166_s7 = smov 64   ;;  %s1167_s27 = smov 4  }
  0x68   :  { %100 = dma.hbm_to_vmem [thread:$0]  %s1382_s9, 2048, %s95_s29, [#allocation12], %s1166_s7, %s1166_s7, %s1167_s27  }
  0x69   :  { %1146 = dma.done.wait [#allocation3], 64  }
  0x6a   :  { %1147 = vsyncadd [#allocation3], 4294967232 }
  0x6b   :  { %1148 = dma.done.wait [#allocation6], 3584  }
  0x6c   :  { %1149 = vsyncadd [#allocation6], 4294963712 }
  0x6d   :  { %1150 = dma.done.wait [#allocation9], 1536  }
  0x6e   :  { %1151 = vsyncadd [#allocation9], 4294965760 }
  0x6f   :  { %1152 = dma.done.wait [#allocation12], 2048  }
  0x70   :  { %1153 = vsyncadd [#allocation12], 4294965248  ;;  %v1168_v0 = vmov 0   ;;  %v916_v1 = vld [vmem:[#allocation5 + $0x4] ss:$8 sps:$4 sm:$0xff]   ;;  %v160_v19 = vlaneseq  ;;  %vm224_vm0 = vcmask 785408  }
  0x71   :  { %260 = vmatprep.mubr.bf16.mxu0 %v1168_v0  ;;  %392 = vmatprep.mubr.bf16.mxu1 %v1168_v0  ;;  %v918_v2 = vld [vmem:[#allocation5] ss:$8 sps:$4 sm:$0xff]   ;;  %v919_v3 = vld [vmem:[#allocation5 + $0x14] ss:$8 sps:$4 sm:$0xff]   ;;  %v921_v4 = vld [vmem:[#allocation5 + $0x10] ss:$8 sps:$4 sm:$0xff]  }
  0x72   :  { %360 = vmatprep.subr.bf16.mxu1 %v916_v1  ;;  %v922_v5 = vld [vmem:[#allocation7 + $0x4] ss:$8 sps:$4 sm:$0xff]   ;;  %v926_v7 = vld [vmem:[#allocation7] ss:$8 sps:$4 sm:$0xff]   ;;  %v928_v8 = vld [vmem:[#allocation7 + $0x14] ss:$8 sps:$4 sm:$0xff]  }
  0x73   :  { %361 = vmatpush1.bf16.msra.mxu1 %v918_v2  ;;  %v924_v6 = vld [vmem:[#allocation5 + $0x24] ss:$8 sps:$4 sm:$0xff]   ;;  %228 = vmatprep.subr.bf16.mxu0 %v922_v5  ;;  %v927_v9 = vld [vmem:[#allocation5 + $0x20] ss:$8 sps:$4 sm:$0xff]   ;;  %v930_v10 = vld [vmem:[#allocation5 + $0x34] ss:$8 sps:$4 sm:$0xff]  }
  0x74   :  { %362 = vmatprep.subr.bf16.mxu1 %v919_v3  ;;  %229 = vmatpush1.bf16.msra.mxu0 %v926_v7  ;;  %v932_v11 = vld [vmem:[#allocation7 + $0x10] ss:$8 sps:$4 sm:$0xff]   ;;  %v934_v12 = vld [vmem:[#allocation7 + $0x24] ss:$8 sps:$4 sm:$0xff]   ;;  %v938_v14 = vld [vmem:[#allocation7 + $0x20] ss:$8 sps:$4 sm:$0xff]  }
  0x75   :  { %230 = vmatprep.subr.bf16.mxu0 %v928_v8  ;;  %v933_v13 = vld [vmem:[#allocation5 + $0x30] ss:$8 sps:$4 sm:$0xff]   ;;  %v940_v15 = vld [vmem:[#allocation7 + $0x34] ss:$8 sps:$4 sm:$0xff]   ;;  %v936_v16 = vld [vmem:[#allocation5 + $0x44] ss:$8 sps:$4 sm:$0xff]  }
  0x76   :  { %v1169_v17 = vmov 1983009808   ;;  %v944_v20 = vld [vmem:[#allocation7 + $0x30] ss:$8 sps:$4 sm:$0xff]   ;;  %v939_v21 = vld [vmem:[#allocation5 + $0x40] ss:$8 sps:$4 sm:$0xff]  }
  0x77   :  { %363 = vmatpush1.bf16.msra.mxu1 %v921_v4  ;;  %v158_v18 = vunpack.c.l.s4 %v1169_v17  ;;  %v946_v22 = vld [vmem:[#allocation7 + $0x44] ss:$8 sps:$4 sm:$0xff]   ;;  %v942_v23 = vld [vmem:[#allocation5 + $0x54] ss:$8 sps:$4 sm:$0xff]   ;;  %v1320_v25 = vshrl.u32 %v160_v19, 7  ;;  %vm461_vm1 = vcmask 523264  }
  0x78   :  { %364 = vmatprep.subr.bf16.mxu1 %v924_v6  ;;  %231 = vmatpush1.bf16.msra.mxu0 %v932_v11  ;;  %v950_v26 = vld [vmem:[#allocation7 + $0x40] ss:$8 sps:$4 sm:$0xff]   ;;  %v140_v27 = vld [vmem:[%s1374_s1] sm:$0x3]  ;;  %v945_v28 = vld [vmem:[#allocation5 + $0x50] ss:$8 sps:$4 sm:$0xff]  }
  0x79   :  { %232 = vmatprep.subr.bf16.mxu0 %v934_v12  ;;  %v159_v24 = vunpack.c.0.s8 %v158_v18  ;;  %v952_v29 = vld [vmem:[#allocation7 + $0x54] ss:$8 sps:$4 sm:$0xff]   ;;  %v948_v31 = vld [vmem:[#allocation5 + $0x64] ss:$8 sps:$4 sm:$0xff]   ;;  %v951_v34 = vld [vmem:[#allocation5 + $0x60] ss:$8 sps:$4 sm:$0xff]  }
  0x7a   :  { %v141_v30 = vld [vmem:[%s1374_s1 + $0x2] sm:$0x3]  ;;  %v956_v35 = vld [vmem:[#allocation7 + $0x50] ss:$8 sps:$4 sm:$0xff]   ;;  %v122_v36 = vld [vmem:[#allocation2] sm:$0x3] }
  0x7b   :  { %365 = vmatpush1.bf16.msra.mxu1 %v927_v9  ;;  %v156_v32 = vcombine.low %v140_v27, %v141_v30  ;;  %v1329_v33 = vsub.s32 %v159_v24, %v1320_v25  ;;  %v123_v37 = vld [vmem:[#allocation2 + $0x2] sm:$0x3]  ;;  %v957_v41 = vld [vmem:[#allocation5 + $0x70] ss:$8 sps:$4 sm:$0xff]   ;;  %v960_v42 = vld [vmem:[#allocation8 + $0x4] ss:$8 sps:$4 sm:$0xff]  }
  0x7c   :  { %366 = vmatprep.subr.bf16.mxu1 %v930_v10  ;;  %233 = vmatpush1.bf16.msra.mxu0 %v938_v14  ;;  %v954_v38 = vld [vmem:[#allocation5 + $0x74] ss:$8 sps:$4 sm:$0xff]   ;;  %v271_v40 = vcombine.low %v122_v36, %v123_v37  ;;  %v958_v43 = vld [vmem:[#allocation8] ss:$8 sps:$4 sm:$0xff]   ;;  %v961_v46 = vld [vmem:[#allocation8 + $0x10] ss:$8 sps:$4 sm:$0xff]  }
  0x7d   :  { %234 = vmatprep.subr.bf16.mxu0 %v940_v15  ;;  %v163_v39 = vrot.slane %v156_v32, %v1329_v33  ;;  %v963_v45 = vld [vmem:[#allocation8 + $0x14] ss:$8 sps:$4 sm:$0xff]   ;;  %v966_v47 = vld [vmem:[#allocation8 + $0x24] ss:$8 sps:$4 sm:$0xff]   ;;  %v964_v48 = vld [vmem:[#allocation8 + $0x20] ss:$8 sps:$4 sm:$0xff]  }
  0x7e   :  { %v278_v44 = vrot.slane %v271_v40, %v1329_v33  ;;  %v401_v49 = vld [vmem:[%s1375_s2] sm:$0x3]  ;;  %v402_v50 = vld [vmem:[%s1375_s2 + $0x2] sm:$0x3]  ;;  %v967_v53 = vld [vmem:[#allocation8 + $0x30] ss:$8 sps:$4 sm:$0xff]  }
  0x7f   :  { %367 = vmatpush1.bf16.msra.mxu1 %v933_v13  ;;  %v969_v51 = vld [vmem:[#allocation8 + $0x34] ss:$8 sps:$4 sm:$0xff]   ;;  %v413_v52 = vcombine.low %v401_v49, %v402_v50  ;;  %v972_v54 = vld [vmem:[#allocation10 + $0x4] ss:$8 sps:$4 sm:$0xff]   ;;  %v970_v56 = vld [vmem:[#allocation10] ss:$8 sps:$4 sm:$0xff]  }
  0x80   :  { %368 = vmatprep.subr.bf16.mxu1 %v936_v16  ;;  %235 = vmatpush1.bf16.msra.mxu0 %v944_v20  ;;  %v508_v57 = vld [vmem:[%s1376_s3] sm:$0x3]  ;;  %v509_v58 = vld [vmem:[%s1376_s3 + $0x2] sm:$0x3]  ;;  %v973_v61 = vld [vmem:[#allocation10 + $0x10] ss:$8 sps:$4 sm:$0xff]  }
  0x81   :  { %236 = vmatprep.subr.bf16.mxu0 %v946_v22  ;;  %v420_v55 = vrot.slane %v413_v52, %v1329_v33  ;;  %v975_v59 = vld [vmem:[#allocation10 + $0x14] ss:$8 sps:$4 sm:$0xff]   ;;  %v516_v60 = vcombine.low %v508_v57, %v509_v58  ;;  %vm544_vm2 = vcmask 261120   ;;  %v976_v63 = vld [vmem:[#allocation11 + $0x40] sm:$0xff]   ;;  %v978_v2 = vld [vmem:[#allocation11 + $0x48] sm:$0xff]   ;;  %v595_v32 = vsub.s32 0, %v1320_v25 }
  0x82   :  { %v977_v1 = vld [vmem:[#allocation11] sm:$0xff]   ;;  %v979_v3 = vld [vmem:[#allocation11 + $0x8] sm:$0xff]   ;;  %v980_v4 = vld [vmem:[#allocation11 + $0x50] sm:$0xff]  }
  0x83   :  { %369 = vmatpush1.bf16.msra.mxu1 %v939_v21  ;;  %v523_v62 = vrot.slane %v516_v60, %v1329_v33  ;;  %v981_v5 = vld [vmem:[#allocation11 + $0x10] sm:$0xff]   ;;  %v982_v6 = vld [vmem:[#allocation11 + $0x58] sm:$0xff]   ;;  %v984_v7 = vld [vmem:[#allocation11 + $0x60] sm:$0xff]  }
  0x84   :  { %370 = vmatprep.subr.bf16.mxu1 %v942_v23  ;;  %237 = vmatpush1.bf16.msra.mxu0 %v950_v26  ;;  %v985_v8 = vld [vmem:[#allocation11 + $0x20] sm:$0xff]   ;;  %v986_v9 = vld [vmem:[#allocation11 + $0x68] sm:$0xff]   ;;  %v988_v11 = vld [vmem:[#allocation11 + $0x70] sm:$0xff]  }
  0x85   :  { %238 = vmatprep.subr.bf16.mxu0 %v952_v29  ;;  %v987_v10 = vld [vmem:[#allocation11 + $0x28] sm:$0xff]   ;;  %v989_v12 = vld [vmem:[#allocation11 + $0x30] sm:$0xff]   ;;  %v990_v13 = vld [vmem:[#allocation11 + $0x78] sm:$0xff]  }
  0x86   :  { %v991_v14 = vld [vmem:[#allocation11 + $0x38] sm:$0xff]  }
  0x87   :  { %371 = vmatpush1.bf16.msra.mxu1 %v945_v28 }
  0x88   :  { %372 = vmatprep.subr.bf16.mxu1 %v948_v31  ;;  %239 = vmatpush1.bf16.msra.mxu0 %v956_v35  ;;  %v599_v35 = vsub.s32 1, %v1320_v25  ;;  %v861_v25 = vld [vmem:[%s1383_s10] ss:$0 sm:$0xff] }
  0x89   :  { %879 = vmatprep.subr.bf16.mxu0 %v976_v63 }
  0x8b   :  { %373 = vmatpush1.bf16.msra.mxu1 %v951_v34  ;;  %830 = vmatmul.mubr.msk.bf16.vlgmr.msra.gmra.mrb[0].mxu0 %vm224_vm0, %v163_v39  ;;  %v591_v34 = vld [vmem:[%s1381_s8] sm:$0x3] }
  0x8c   :  { %374 = vmatprep.subr.bf16.mxu1 %v954_v38  ;;  %880 = vmatpush3.bf16.msra.mxu0 %v977_v1  ;;  %v596_v36 = vrot.slane %v591_v34, %v595_v32  ;;  %v600_v38 = vrot.slane %v591_v34, %v599_v35 }
  0x8d   :  { %881 = vmatprep.subr.bf16.mxu0 %v978_v2 }
  0x8f   :  { %375 = vmatpush1.bf16.msra.mxu1 %v957_v41 }
  0x90   :  { %465 = vmatprep.subr.bf16.mxu1 %v960_v42  ;;  %882 = vmatpush3.bf16.msra.mxu0 %v979_v3 }
  0x91   :  { %883 = vmatprep.subr.bf16.mxu0 %v980_v4 }
  0x92   :  { %393 = vmatmul.mubr.bf16.vlgmr.msra.gmra.mrb[0].mxu1 %v278_v44 }
  0x93   :  { %466 = vmatpush1.bf16.msra.mxu1 %v958_v43  ;;  %497 = vmatprep.mubr.bf16.mxu1 %v1168_v0 }
  0x94   :  { %467 = vmatprep.subr.bf16.mxu1 %v963_v45  ;;  %884 = vmatpush3.bf16.msra.mxu0 %v981_v5 }
  0x95   :  { %885 = vmatprep.subr.bf16.mxu0 %v982_v6 }
  0x97   :  { %468 = vmatpush1.bf16.msra.mxu1 %v961_v46 }
  0x98   :  { %469 = vmatprep.subr.bf16.mxu1 %v966_v47 }
  0x9b   :  { %470 = vmatpush1.bf16.msra.mxu1 %v964_v48 }
  0x9c   :  { %471 = vmatprep.subr.bf16.mxu1 %v969_v51 }
  0x9f   :  { %472 = vmatpush1.bf16.msra.mxu1 %v967_v53 }
  0xa0   :  { %548 = vmatprep.subr.bf16.mxu1 %v972_v54 }
  0xa2   :  { %855 = vmatmul.mubr.msk.bf16.vlgmr.msra.gmra.mrb[4].mxu1 %vm461_vm1, %v420_v55 }
  0xa3   :  { %549 = vmatpush1.bf16.msra.mxu1 %v970_v56  ;;  %580 = vmatprep.mubr.bf16.mxu1 %v1168_v0  ;;  %v983_v0 = vld [vmem:[#allocation11 + $0x18] sm:$0xff]  }
  0xa4   :  { %550 = vmatprep.subr.bf16.mxu1 %v975_v59  ;;  %886 = vmatpush3.bf16.msra.mxu0 %v983_v0 }
  0xa5   :  { %887 = vmatprep.subr.bf16.mxu0 %v984_v7 }
  0xa7   :  { %551 = vmatpush1.bf16.msra.mxu1 %v973_v61 }
  0xa8   :  { %888 = vmatpush3.bf16.msra.mxu0 %v985_v8 }
  0xa9   :  { %889 = vmatprep.subr.bf16.mxu0 %v986_v9 }
  0xaa   :  { %860 = vmatmul.mubr.msk.bf16.vlgmr.msra.gmra.mrb[8].mxu1 %vm544_vm2, %v523_v62 }
  0xac   :  { %890 = vmatpush3.bf16.msra.mxu0 %v987_v10 }
  0xad   :  { %891 = vmatprep.subr.bf16.mxu0 %v988_v11 }
  0xb0   :  { %892 = vmatpush3.bf16.msra.mxu0 %v989_v12 }
  0xb1   :  { %893 = vmatprep.subr.bf16.mxu0 %v990_v13 }
  0xb4   :  { %894 = vmatpush3.bf16.msra.mxu0 %v991_v14 }
 0x15e   :  { %v262_v15 = vpop.f32.mrb[0].mxu0 }
 0x15f   :  { %v264_v16 = vpop.f32.mrb[1].mxu0 }
 0x160   :  { %v266_v17 = vpop.f32.mrb[2].mxu0 }
 0x161   :  { %v267_v18 = vpop.f32.mrb[3].mxu0 }
 0x165   :  { %v394_v19 = vpop.f32.mrb[0].mxu1 }
 0x166   :  { %v395_v20 = vadd.f32 %v394_v19, %v262_v15  ;;  %v396_v21 = vpop.f32.mrb[1].mxu1 }
 0x167   :  { %v397_v22 = vadd.f32 %v396_v21, %v264_v16  ;;  %v398_v23 = vpop.f32.mrb[2].mxu1 }
 0x168   :  { %v399_v24 = vpop.f32.mrb[3].mxu1 }
 0x175   :  { %v499_v26 = vpop.f32.mrb[4].mxu1 }
 0x176   :  { %v506_v27 = vadd.f32 %v499_v26, %v395_v20  ;;  %v501_v28 = vpop.f32.mrb[5].mxu1 }
 0x177   :  { %v507_v29 = vadd.f32 %v501_v28, %v397_v22  ;;  %v503_v30 = vpop.f32.mrb[6].mxu1 }
 0x178   :  { %v504_v31 = vpop.f32.mrb[7].mxu1 }
 0x17d   :  { %v582_v37 = vpop.f32.mrb[8].mxu1 }
 0x17e   :  { %v589_v39 = vadd.f32 %v582_v37, %v506_v27  ;;  %v584_v40 = vpop.f32.mrb[9].mxu1 }
 0x17f   :  { %v590_v41 = vadd.f32 %v584_v40, %v507_v29  ;;  %v586_v42 = vpop.f32.mrb[10].mxu1 }
 0x180   :  { %v603_v43 = vadd.f32 %v596_v36, %v589_v39  ;;  %v587_v44 = vpop.f32.mrb[11].mxu1 }
 0x181   :  { %v604_v45 = vadd.f32 %v600_v38, %v590_v41 }
 0x182   :  { %v605_v46 = vmax.f32 %v603_v43, 0.0 }
 0x183   :  { %v606_v47 = vmax.f32 %v604_v45, 0.0 }
 0x184   :  { %v607_v49 = vpack.c.bf16 %v605_v46, %v605_v46 }
 0x185   :  { %v608_v48 = vpack.c.bf16 %v606_v47, %v606_v47 }
 0x187   :  { %776 = vmatprep.mubr.bf16.mxu0 %v608_v48 }
 0x188   :  { %777 = vmatmul.mubr.bf16.vlgmr.msra.gmra.mrb[4].mxu0 %v607_v49 }
 0x25b   :  { %v895_v50 = vpop.f32.mrb[4].mxu0 }
 0x25c   :  { %v896_v51 = vpop.f32.mrb[5].mxu0 }
 0x25d   :  { %v897_v52 = vadd.f32 %v896_v51, %v895_v50  ;;  %v898_v53 = vpop.f32.mrb[6].mxu0 }
 0x25e   :  { %v899_v54 = vpop.f32.mrb[7].mxu0 }
 0x25f   :  { %v779_v55 = vadd.f32 %v897_v52, %v861_v25 }
 0x261   :  { %v784_v56 = vpack.c.bf16 %v779_v55, %v779_v55 }
 0x263   :  { %v792_v57 = vrot.slane %v784_v56, %v1329_v33  ;;  %878 = vst.sshfl [vmem:[#allocation13] sm:$0x3 pattern:$0x76325410] %v784_v56 }
 0x265   :  { %v793_v58 = vcombine.high %v792_v57, %v792_v57 }
 0x267   :  { %797 = vst [vmem:[#allocation13 + $0x2] sm:$0x3] %v793_v58 }
 0x268   :  { %802 = vsyncadd [#allocation4], 32  ;;  %s1170_s12 = smov [#allocation13]  }
 0x269   :  { %s803_s14 = sshll.u32 %s1170_s12, 4  ;;  %s804_s14 = int_to_ptr.vmem [resolvable:$true] %s803_s14 }
 0x26a   :  { %s1124_s0 = scalar_lea.vmem %s804_s14, 32  ;;  %s1128_s15 = scalar_lea.vmem %s804_s14, 64 }
 0x26b   :  { %p1125_p6 = scmp.ne.s32.totalorder %s804_s14, %s1124_s0  ;;  %p1129_p7 = scmp.lt.s32.totalorder %s804_s14, %s804_s14 }
 0x26c   :  { %p1130_p8 = scmp.lt.s32.totalorder %s1128_s15, %s1124_s0 }
 0x26e   :  { %p1131_p9 = por %p1130_p8, %p1129_p7 }
 0x270   :  { %p1132_p10 = pnand %p1131_p9, %p1125_p6 }
 0x272   :  { %1135 = shalt.err (!%p1132_p10)
}
 0x273   :  { %s1136_s17 = scalar_lea.hbm %s1384_s11, 32 }
 0x274   :  { %p1137_p11 = scmp.ne.s32.totalorder %s1384_s11, %s1136_s17  ;;  %p1140_p12 = scmp.lt.u32.totalorder %s1136_s17, %s1384_s11 }
 0x276   :  { %p1142_p13 = pnand %p1140_p12, %p1137_p11 }
 0x278   :  { %1145 = shalt.err (!%p1142_p13)
}
 0x279   :  { %809 = dma.vmem_to_hbm [thread:$0]  %s804_s14, 32, %s1384_s11, [#allocation4], %s1161_s6, %s1161_s6, %s1162_s13  }
 0x27a   :  { %1154 = dma.done.wait [#allocation4], 64  }
 0x27b   :  { %1155 = vsyncadd [#allocation4], 4294967232 }
 0x27c   :  { %813 = vsyncpa [#allocation3], 1 }
 0x27d   :  { %814 = vsyncpa [#allocation6], 1 }
 0x27e   :  { %815 = vsyncpa [#allocation9], 1 }
 0x27f   :  { %816 = vsyncpa [#allocation12], 1 }
 0x280   :  { %817 = vsyncpa [#allocation4], 1 }

</bundles_post_ra>
